<compile_context>
chip_gen: v5e
topology: v5e:2x2
jax: 0.10.0
libtpu: 0.0.40
codegen_flags: <defaults>
</compile_context>

<pallas_src>
import jax
import jax.numpy as jnp
import numpy as np
from jax import lax
from jax.experimental import pallas as pl
from jax.experimental.pallas import tpu as pltpu


def _round_up(x, m):
    return (x + m - 1) // m * m


# ---------------------------------------------------------------------------
# Kernel 1: input projection, parallel over row blocks of the flattened (T*B) axis.
#   x2  : (R, IP)      bf16
#   w   : (IP, 2*GP)   bf16   columns = [fwd r|z|n | bwd r|z|n], each gate HP wide
#   b   : (1, 2*GP)    f32    b_ih (+ b_hh for r,z gates)
#   out : (R, 2*GP)    bf16
# ---------------------------------------------------------------------------
def _input_proj_kernel(x_ref, w_ref, b_ref, o_ref):
    acc = jnp.dot(x_ref[...], w_ref[...], preferred_element_type=jnp.float32)
    o_ref[...] = (acc + b_ref[...]).astype(o_ref.dtype)


# ---------------------------------------------------------------------------
# Kernel 2: bidirectional GRU recurrence, Tb timesteps per grid step.
# Built as a closure so static config (T, Tb, nblk, padding mask flag) is baked in.
# ---------------------------------------------------------------------------
def _make_recurrent_kernel(t_total, tb, nblk, bp, hp, gp, needs_mask):
    def kernel(gif_ref, gib_ref, whh_ref, bhn_ref,
               out_f_ref, out_b_ref, hn_ref,
               h_f, h_b):
        blk = pl.program_id(0)

        @pl.when(blk == 0)
        def _init():
            h_f[...] = jnp.zeros_like(h_f)
            h_b[...] = jnp.zeros_like(h_b)

        # Resident block-diagonal recurrent weights (constant-index BlockSpec: one
        # prologue DMA for the whole grid), loaded once per grid step.
        whh = whh_ref[...]                                   # (2*HP, 2*GP) bf16

        # Pre-broadcast the n-gate hidden biases ONCE (JAX does not CSE broadcasts;
        # doing it inside the unrolled loop would cost 2*Tb VPU broadcasts).
        bhn_f = pl.broadcast_to(bhn_ref[0:1, :], (bp, hp))
        bhn_b = pl.broadcast_to(bhn_ref[1:2, :], (bp, hp))

        def gates(gi, gh, h_prev, bhn):
            # Gate slices at multiples of hp (=128k): lane-aligned full vreg blocks.
            r = jax.nn.sigmoid(gi[:, 0:hp] + gh[:, 0:hp])
            z = jax.nn.sigmoid(gi[:, hp:2 * hp] + gh[:, hp:2 * hp])
            n = jnp.tanh(gi[:, 2 * hp:3 * hp] + r * (gh[:, 2 * hp:3 * hp] + bhn))
            return (1.0 - z) * n + z * h_prev

        def body(j, carry):
            hf, hb = carry
            jb = tb - 1 - j                       # backward walks the block in reverse
            # One fused block-diagonal matmul for both directions: K = 2*HP = 256.
            h_cat = jnp.concatenate([hf, hb], axis=1).astype(jnp.bfloat16)
            gh = jnp.dot(h_cat, whh, preferred_element_type=jnp.float32)
            gi_f = gif_ref[j].astype(jnp.float32)
            gi_b = gib_ref[jb].astype(jnp.float32)
            hf_new = gates(gi_f, gh[:, 0:gp], hf, bhn_f)
            hb_new = gates(gi_b, gh[:, gp:2 * gp], hb, bhn_b)
            if needs_mask:
                # Time axis was padded up to nblk*Tb; freeze the carry on padded steps.
                t_f = blk * tb + j
                t_b = (nblk - 1 - blk) * tb + jb
                hf_new = jnp.where(t_f < t_total, hf_new, hf)
                hb_new = jnp.where(t_b < t_total, hb_new, hb)
            out_f_ref[j] = hf_new.astype(out_f_ref.dtype)
            out_b_ref[jb] = hb_new.astype(out_b_ref.dtype)
            return hf_new, hb_new

        hf, hb = lax.fori_loop(0, tb, body, (h_f[...], h_b[...]),
                               unroll=min(tb, 8))
        h_f[...] = hf
        h_b[...] = hb

        # Final-state block is resident across the grid: write it exactly once.
        @pl.when(blk == pl.num_programs(0) - 1)
        def _final():
            hn_ref[0] = hf.astype(hn_ref.dtype)
            hn_ref[1] = hb.astype(hn_ref.dtype)

    return kernel


# ---------------------------------------------------------------------------
# Wrapper
# ---------------------------------------------------------------------------
def _pad_gate_cols(w_t, h, hp):
    """(K, 3h) -> (K, 3hp): each r/z/n gate block zero-padded to hp lanes."""
    parts = [jnp.pad(w_t[:, g * h:(g + 1) * h], ((0, 0), (0, hp - h))) for g in range(3)]
    return jnp.concatenate(parts, axis=1)


def _pad_gate_vec(b, h, hp):
    parts = [jnp.pad(b[g * h:(g + 1) * h], (0, hp - h)) for g in range(3)]
    return jnp.concatenate(parts)


def encoder_forward(x, params, hidden_size, time_block=32):
    """Bidirectional GRU forward. x: (T, B, I) f32. Returns (output (T,B,2H), h_n (2,B,H))."""
    T, B, I = x.shape
    H = hidden_size
    HP = _round_up(H, 128)       # lane-aligned per-gate width
    IP = _round_up(I, 128)       # lane-aligned input width (dense MXU K loads)
    BP = _round_up(B, 8)         # full sublanes
    GP = 3 * HP

    Tb = min(time_block, T)      # timesteps per grid step
    TP = _round_up(T, Tb)        # padded time (masked in-kernel; no Tb->1 cliff)
    nblk = TP // Tb
    needs_mask = TP != T

    def prep(wih, whh, bih, bhh):
        wih_p = jnp.pad(_pad_gate_cols(wih.T, H, HP), ((0, IP - I), (0, 0)))   # (IP, GP)
        whh_p = jnp.pad(_pad_gate_cols(whh.T, H, HP), ((0, HP - H), (0, 0)))   # (HP, GP)
        # r,z hidden biases fold into the input projection; n-gate b_hh stays separate.
        b_proj = _pad_gate_vec(
            jnp.concatenate([bih[:2 * H] + bhh[:2 * H], bih[2 * H:]]), H, HP)  # (GP,)
        bhn = jnp.pad(bhh[2 * H:], (0, HP - H))                                # (HP,)
        return wih_p, whh_p, b_proj, bhn

    wih_f, whh_f, bpf, bhnf = prep(params["weight_ih_l0"], params["weight_hh_l0"],
                                   params["bias_ih_l0"], params["bias_hh_l0"])
    wih_b, whh_b, bpb, bhnb = prep(params["weight_ih_l0_reverse"], params["weight_hh_l0_reverse"],
                                   params["bias_ih_l0_reverse"], params["bias_hh_l0_reverse"])

    # Projection operands in bf16 (native MXU format); accumulation stays f32.
    w_all = jnp.concatenate([wih_f, wih_b], axis=1).astype(jnp.bfloat16)      # (IP, 2*GP)
    b_all = jnp.concatenate([bpf, bpb]).reshape(1, 2 * GP)                    # (1, 2*GP) f32

    # Block-diagonal recurrent weights: rows [h_f; h_b], cols [fwd r z n | bwd r z n].
    whh_bd = jnp.zeros((2 * HP, 2 * GP), jnp.float32)
    whh_bd = whh_bd.at[:HP, :GP].set(whh_f).at[HP:, GP:].set(whh_b)
    whh_bd = whh_bd.astype(jnp.bfloat16)                                      # (2*HP, 2*GP)
    bhn_stack = jnp.stack([bhnf, bhnb], axis=0)                               # (2, HP) f32

    x_pad = jnp.zeros((TP, BP, IP), jnp.bfloat16).at[:T, :B, :I].set(x.astype(jnp.bfloat16))
    x2 = x_pad.reshape(TP * BP, IP)

    # ---- 1) Hoisted input projection (parallel grid, row tile decoupled from Tb). ----
    R = TP * BP
    rows_blk = Tb * BP                       # >= 256 rows once T >= 32
    while rows_blk > 1024 and rows_blk % 2 == 0:
        rows_blk //= 2                       # cap block size; still divides R
    # TODO(synk): for very large I/H, add a column-tiling grid axis over 2*GP and set
    # vmem_limit_bytes so the weight block stays inside v7x's 64 MiB VMEM.
    gi2 = pl.pallas_call(
        _input_proj_kernel,
        out_shape=jax.ShapeDtypeStruct((R, 2 * GP), jnp.bfloat16),
        grid_spec=pltpu.PrefetchScalarGridSpec(
            num_scalar_prefetch=0,
            grid=(R // rows_blk,),
            in_specs=[
                pl.BlockSpec((rows_blk, IP), lambda m: (m, 0)),
                pl.BlockSpec((IP, 2 * GP), lambda m: (0, 0)),   # constant index: one DMA
                pl.BlockSpec((1, 2 * GP), lambda m: (0, 0)),
            ],
            out_specs=pl.BlockSpec((rows_blk, 2 * GP), lambda m: (m, 0)),
        ),
        compiler_params=pltpu.CompilerParams(dimension_semantics=("parallel",)),
    )(x2, w_all, b_all)
    gi_all = gi2.reshape(TP, BP, 2 * GP)

    # ---- 2) Sequential bidirectional recurrence, Tb timesteps per grid step. ----
    # TODO(synk): on v7x the two directions could be split across the two TensorCores
    # (direction as a core-parallel axis / pl.core_map); kept fused into one block-diag
    # matmul here, which maximizes MXU fill on the single-TC v5e/v6e targets.
    kernel = _make_recurrent_kernel(T, Tb, nblk, BP, HP, GP, needs_mask)
    out_f, out_b, h_n = pl.pallas_call(
        kernel,
        out_shape=(
            jax.ShapeDtypeStruct((TP, BP, HP), jnp.float32),
            jax.ShapeDtypeStruct((TP, BP, HP), jnp.float32),
            jax.ShapeDtypeStruct((2, BP, HP), jnp.float32),
        ),
        grid_spec=pltpu.PrefetchScalarGridSpec(
            num_scalar_prefetch=0,
            grid=(nblk,),
            in_specs=[
                pl.BlockSpec((Tb, BP, GP), lambda m: (m, 0, 0)),                # fwd gates
                pl.BlockSpec((Tb, BP, GP), lambda m: (nblk - 1 - m, 0, 1)),     # bwd gates (reversed blocks)
                pl.BlockSpec((2 * HP, 2 * GP), lambda m: (0, 0)),               # block-diag W_hh (one DMA)
                pl.BlockSpec((2, HP), lambda m: (0, 0)),                        # n-gate hidden biases
            ],
            out_specs=[
                pl.BlockSpec((Tb, BP, HP), lambda m: (m, 0, 0)),
                pl.BlockSpec((Tb, BP, HP), lambda m: (nblk - 1 - m, 0, 0)),
                pl.BlockSpec((2, BP, HP), lambda m: (0, 0, 0)),
            ],
            scratch_shapes=[
                pltpu.VMEM((BP, HP), jnp.float32),       # forward hidden state
                pltpu.VMEM((BP, HP), jnp.float32),       # backward hidden state
            ],
        ),
        compiler_params=pltpu.CompilerParams(
            dimension_semantics=("arbitrary",),          # time recurrence is sequential
        ),
    )(gi_all, gi_all, whh_bd, bhn_stack)

    # TODO(synk): if downstream can consume separate fwd/bwd arrays, skip this concat
    # (it is an extra memory-bound pass over the full output); kept for PyTorch parity.
    output = jnp.concatenate([out_f[:T, :B, :H], out_b[:T, :B, :H]], axis=-1)  # (T, B, 2H)
    return output, h_n[:, :B, :H]


# ---------------------------------------------------------------------------
# Params init + pure-JAX reference (for the built-in correctness check)
# ---------------------------------------------------------------------------
def init_gru_params(key, input_size, hidden_size):
    """Deterministic init mimicking PyTorch's uniform(-1/sqrt(H), 1/sqrt(H))."""
    H, I = hidden_size, input_size
    bound = 1.0 / np.sqrt(H)
    names_shapes = [
        ("weight_ih_l0", (3 * H, I)),
        ("weight_hh_l0", (3 * H, H)),
        ("bias_ih_l0", (3 * H,)),
        ("bias_hh_l0", (3 * H,)),
        ("weight_ih_l0_reverse", (3 * H, I)),
        ("weight_hh_l0_reverse", (3 * H, H)),
        ("bias_ih_l0_reverse", (3 * H,)),
        ("bias_hh_l0_reverse", (3 * H,)),
    ]
    params = {}
    keys = jax.random.split(key, len(names_shapes))
    for k, (name, shape) in zip(keys, names_shapes):
        params[name] = jax.random.uniform(
            k, shape, dtype=jnp.float32, minval=-bound, maxval=bound
        )
    return params


def gru_reference(x, params, hidden_size):
    """Pure-JAX f32 reference matching torch.nn.GRU(bidirectional=True) math."""
    H = hidden_size

    def run_dir(x_seq, wih, whh, bih, bhh):
        def step(h, xt):
            gi = xt @ wih.T + bih
            gh = h @ whh.T + bhh
            i_r, i_z, i_n = jnp.split(gi, 3, axis=-1)
            h_r, h_z, h_n = jnp.split(gh, 3, axis=-1)
            r = jax.nn.sigmoid(i_r + h_r)
            z = jax.nn.sigmoid(i_z + h_z)
            n = jnp.tanh(i_n + r * h_n)
            h_new = (1.0 - z) * n + z * h
            return h_new, h_new

        h0 = jnp.zeros((x_seq.shape[1], H), jnp.float32)
        hT, outs = jax.lax.scan(step, h0, x_seq)
        return outs, hT

    out_f, hT_f = run_dir(
        x, params["weight_ih_l0"], params["weight_hh_l0"],
        params["bias_ih_l0"], params["bias_hh_l0"],
    )
    out_b_rev, hT_b = run_dir(
        x[::-1], params["weight_ih_l0_reverse"], params["weight_hh_l0_reverse"],
        params["bias_ih_l0_reverse"], params["bias_hh_l0_reverse"],
    )
    out_b = out_b_rev[::-1]
    output = jnp.concatenate([out_f, out_b], axis=-1)
    h_n = jnp.stack([hT_f, hT_b], axis=0)
    return output, h_n


if __name__ == "__main__":
    T, B, I, H = 16, 4, 16, 32   # seq, batch, input_size, hidden_size

    key = jax.random.PRNGKey(0)
    kx, kp = jax.random.split(key)
    x = jax.random.normal(kx, (T, B, I), dtype=jnp.float32)
    params = init_gru_params(kp, I, H)

    output, h_n = encoder_forward(x, params, H)
    output = jax.block_until_ready(output)
    h_n = jax.block_until_ready(h_n)

    # Sanity check against a pure-f32 JAX reference (bf16 matmul operands / bf16 gi
    # stream -> relaxed tolerance; carries and accumulation stay f32).
    ref_out, ref_hn = gru_reference(x, params, H)
    np.testing.assert_allclose(np.asarray(output), np.asarray(ref_out), rtol=2e-2, atol=2e-2)
    np.testing.assert_allclose(np.asarray(h_n), np.asarray(ref_hn), rtol=2e-2, atol=2e-2)

    assert output.shape == (T, B, 2 * H)
    assert h_n.shape == (2, B, H)
    print("KERNEL_OK")
</pallas_src>

<mosaic_0001>
module attributes {stable_mosaic.version = 11 : i64} {
  func.func @_input_proj_kernel(%arg0: i32, %arg1: memref<128x128xbf16, #tpu.memory_space<vmem>>, %arg2: memref<128x768xbf16, #tpu.memory_space<vmem>>, %arg3: memref<1x768xf32, #tpu.memory_space<vmem>>, %arg4: memref<128x768xbf16, #tpu.memory_space<vmem>>) attributes {dimension_semantics = [#tpu.dimension_semantics<parallel>], iteration_bounds = array<i64: 1>, scalar_prefetch = 0 : i64, scratch_operands = 0 : i64, tpu.core_type = #tpu.core_type<tc>, window_params = [{transform_indices = @transform_0, window_bounds = array<i64: 128, 128>}, {pipeline_mode = #tpu.pipeline_mode<synchronous>, transform_indices = @transform_1, window_bounds = array<i64: 128, 768>}, {pipeline_mode = #tpu.pipeline_mode<synchronous>, transform_indices = @transform_2, window_bounds = array<i64: 1, 768>}, {transform_indices = @transform_3, window_bounds = array<i64: 128, 768>}]} {
    %c0 = arith.constant 0 : index
    %c0_0 = arith.constant 0 : index
    %0 = vector.load %arg1[%c0, %c0_0] : memref<128x128xbf16, #tpu.memory_space<vmem>>, vector<128x128xbf16>
    %c0_1 = arith.constant 0 : index
    %c0_2 = arith.constant 0 : index
    %1 = vector.load %arg2[%c0_1, %c0_2] : memref<128x768xbf16, #tpu.memory_space<vmem>>, vector<128x768xbf16>
    %cst = arith.constant dense<0.000000e+00> : vector<128x768xf32>
    %2 = tpu.matmul %0, %1, %cst {dimension_numbers = #tpu.dot_dimension_numbers<[1], [0], [0], [1], [0, 0, 1, 1], [], []>} : vector<128x128xbf16>, vector<128x768xbf16>, vector<128x768xf32> -> vector<128x768xf32>
    %c0_3 = arith.constant 0 : index
    %c0_4 = arith.constant 0 : index
    %3 = vector.load %arg3[%c0_3, %c0_4] : memref<1x768xf32, #tpu.memory_space<vmem>>, vector<1x768xf32>
    %4 = vector.broadcast %3 : vector<1x768xf32> to vector<128x768xf32>
    %5 = arith.addf %2, %4 : vector<128x768xf32>
    %6 = arith.truncf %5 : vector<128x768xf32> to vector<128x768xbf16>
    %c0_5 = arith.constant 0 : index
    %c0_6 = arith.constant 0 : index
    %7 = vector.load %arg4[%c0_5, %c0_6] : memref<128x768xbf16, #tpu.memory_space<vmem>>, vector<128x768xbf16>
    tpu.vector_store %arg4[%c0_5, %c0_6], %6 {strides = array<i32>} : memref<128x768xbf16, #tpu.memory_space<vmem>>, vector<128x768xbf16>,
    return
  }
  func.func @transform_0(%arg0: i32) -> (i32, i32) {
    %c0_i32 = arith.constant 0 : i32
    %c0_i32_0 = arith.constant 0 : i32
    return %arg0, %c0_i32 : i32, i32
  }
  func.func @transform_1(%arg0: i32) -> (i32, i32) {
    %c0_i32 = arith.constant 0 : i32
    %c0_i32_0 = arith.constant 0 : i32
    %c0_i32_1 = arith.constant 0 : i32
    return %c0_i32, %c0_i32_0 : i32, i32
  }
  func.func @transform_2(%arg0: i32) -> (i32, i32) {
    %c0_i32 = arith.constant 0 : i32
    %c0_i32_0 = arith.constant 0 : i32
    %c0_i32_1 = arith.constant 0 : i32
    return %c0_i32, %c0_i32_0 : i32, i32
  }
  func.func @transform_3(%arg0: i32) -> (i32, i32) {
    %c0_i32 = arith.constant 0 : i32
    %c0_i32_0 = arith.constant 0 : i32
    return %arg0, %c0_i32 : i32, i32
  }
}

</mosaic_0001>

<bundles_post_ra>
// kernel: tpu_custom_call.1
= control target key start
LH: loop header
LB: loop body
LE: loop exit
PB: predicated region body
PF: predicated region fallthrough
CT: control target
= control target key end

     0   :  { %8 = vsyncpa [#allocation3], 0  ;;  %s1452_s0 = inlined_call_operand.hbm [shape: bf16[128,128], index: 0, kind: input, shape index: {}]   ;;  %s1453_s1 = inlined_call_operand.hbm [shape: bf16[128,768], index: 1, kind: input, shape index: {}]   ;;  %s1454_s2 = inlined_call_operand.hbm [shape: f32[1,768], index: 2, kind: input, shape index: {}]   ;;  %s1455_s3 = inlined_call_operand.hbm [shape: bf16[128,768], index: 3, kind: output, shape index: {}]  }
   0x1   :  { %9 = vsyncpa [#allocation6], 0  ;;  %s28_s14 = sshll.u32 %s1453_s1, 4  ;;  %s29_s14 = int_to_ptr.hbm [resolvable:$true] %s28_s14 }
   0x2   :  { %10 = vsyncpa [#allocation4], 0  ;;  %s1242_s15 = smov [#allocation5]   ;;  %s15_s19 = sshll.u32 %s1452_s0, 4  ;;  %s16_s19 = int_to_ptr.hbm [resolvable:$true] %s15_s19 }
   0x3   :  { %s30_s16 = sshll.u32 %s1242_s15, 4  ;;  %s1243_s20 = smov 384   ;;  %s31_s16 = int_to_ptr.vmem [resolvable:$true] %s30_s16 }
   0x4   :  { %s1244_s21 = smov 24   ;;  %s1245_s22 = smov [#allocation2]  }
   0x5   :  { %36 = dma.hbm_to_vmem [thread:$0]  %s29_s14, 6144, %s31_s16, [#allocation6], %s1243_s20, %s1243_s20, %s1244_s21  }
   0x6   :  { %s17_s23 = sshll.u32 %s1245_s22, 4  ;;  %s1246_s1 = smov 64   ;;  %s18_s23 = int_to_ptr.vmem [resolvable:$true] %s17_s23 }
   0x7   :  { %s1247_s24 = smov 4   ;;  %s42_s27 = sshll.u32 %s1454_s2, 4  ;;  %s43_s27 = int_to_ptr.hbm [resolvable:$true] %s42_s27 }
   0x8   :  { %23 = dma.hbm_to_vmem [thread:$0]  %s16_s19, 1024, %s18_s23, [#allocation3], %s1246_s1, %s1246_s1, %s1247_s24  }
   0x9   :  { %s1248_s28 = smov [#allocation7]  }
   0xa   :  { %s44_s0 = sshll.u32 %s1248_s28, 4  ;;  %s45_s0 = int_to_ptr.vmem [resolvable:$true] %s44_s0 }
   0xb   :  { %47 = dma.hbm_to_vmem [thread:$0]  %s43_s27, 96, %s45_s0, [#allocation6]  }
   0xc   :  { %1236 = dma.done.wait [#allocation3], 1024  }
   0xd   :  { %1237 = vsyncadd [#allocation3], 4294966272 }
   0xe   :  { %1238 = dma.done.wait [#allocation6], 6240  }
   0xf   :  { %1239 = vsyncadd [#allocation6], 4294961056  ;;  %v1038_v0 = vld [vmem:[#allocation5 + $0x150] sm:$0xf]  ;;  %v1113_v1 = vld [vmem:[#allocation5 + $0x164] sm:$0xf0] }
  0x10   :  { %v1110_v2 = vld [vmem:[#allocation5 + $0x154] sm:$0xf]  ;;  %v1039_v3 = vor.u32 %v1113_v1, %v1038_v0  ;;  %v1040_v4 = vld [vmem:[#allocation5 + $0x168] sm:$0xf0]  ;;  %v1014_v5 = vld [vmem:[#allocation5 + $0x120] sm:$0xf] }
  0x11   :  { %v1107_v6 = vld [vmem:[#allocation5 + $0x134] sm:$0xf0]  ;;  %v1043_v7 = vor.u32 %v1110_v2, %v1040_v4  ;;  %v1104_v8 = vld [vmem:[#allocation5 + $0x124] sm:$0xf]  ;;  %v1016_v9 = vld [vmem:[#allocation5 + $0x138] sm:$0xf0] }
  0x12   :  { %426 = vmatpush.bf16.msra.mxu0 %v1039_v3  ;;  %1116 = vmatpush.bf16.msra.mxu2 %v1039_v3  ;;  %v1015_v10 = vor.u32 %v1107_v6, %v1014_v5  ;;  %v1019_v11 = vor.u32 %v1104_v8, %v1016_v9  ;;  %v990_v12 = vld [vmem:[#allocation5 + $0xf0] sm:$0xf]  ;;  %v1101_v13 = vld [vmem:[#allocation5 + $0x104] sm:$0xf0]  ;;  %v1098_v14 = vld [vmem:[#allocation5 + $0xf4] sm:$0xf] }
  0x13   :  { %475 = vmatpush.bf16.msra.mxu1 %v1043_v7  ;;  %1124 = vmatpush.bf16.msra.mxu3 %v1043_v7  ;;  %v992_v15 = vld [vmem:[#allocation5 + $0x108] sm:$0xf0]  ;;  %v991_v16 = vor.u32 %v1101_v13, %v990_v12  ;;  %v966_v18 = vld [vmem:[#allocation5 + $0xc0] sm:$0xf]  ;;  %v1095_v19 = vld [vmem:[#allocation5 + $0xd4] sm:$0xf0] }
  0x14   :  { %v995_v17 = vor.u32 %v1098_v14, %v992_v15  ;;  %v1092_v20 = vld [vmem:[#allocation5 + $0xc4] sm:$0xf]  ;;  %v968_v21 = vld [vmem:[#allocation5 + $0xd8] sm:$0xf0]  ;;  %v967_v22 = vor.u32 %v1095_v19, %v966_v18  ;;  %v942_v24 = vld [vmem:[#allocation5 + $0x90] sm:$0xf] }
  0x15   :  { %v971_v23 = vor.u32 %v1092_v20, %v968_v21  ;;  %v1089_v25 = vld [vmem:[#allocation5 + $0xa4] sm:$0xf0]  ;;  %v1086_v26 = vld [vmem:[#allocation5 + $0x94] sm:$0xf]  ;;  %v944_v27 = vld [vmem:[#allocation5 + $0xa8] sm:$0xf0] }
  0x16   :  { %427 = vmatpush.bf16.msra.mxu0 %v1015_v10  ;;  %1117 = vmatpush.bf16.msra.mxu2 %v1015_v10  ;;  %v943_v28 = vor.u32 %v1089_v25, %v942_v24  ;;  %v947_v29 = vor.u32 %v1086_v26, %v944_v27  ;;  %v918_v30 = vld [vmem:[#allocation5 + $0x60] sm:$0xf]  ;;  %v1083_v31 = vld [vmem:[#allocation5 + $0x74] sm:$0xf0]  ;;  %v1080_v32 = vld [vmem:[#allocation5 + $0x64] sm:$0xf] }
  0x17   :  { %476 = vmatpush.bf16.msra.mxu1 %v1019_v11  ;;  %1125 = vmatpush.bf16.msra.mxu3 %v1019_v11  ;;  %v920_v33 = vld [vmem:[#allocation5 + $0x78] sm:$0xf0]  ;;  %v919_v34 = vor.u32 %v1083_v31, %v918_v30  ;;  %v894_v36 = vld [vmem:[#allocation5 + $0x30] sm:$0xf]  ;;  %v1077_v37 = vld [vmem:[#allocation5 + $0x44] sm:$0xf0] }
  0x18   :  { %v923_v35 = vor.u32 %v1080_v32, %v920_v33  ;;  %v1074_v38 = vld [vmem:[#allocation5 + $0x34] sm:$0xf]  ;;  %v896_v39 = vld [vmem:[#allocation5 + $0x48] sm:$0xf0]  ;;  %v895_v40 = vor.u32 %v1077_v37, %v894_v36  ;;  %v870_v42 = vld [vmem:[#allocation5] sm:$0xf] }
  0x19   :  { %v899_v41 = vor.u32 %v1074_v38, %v896_v39  ;;  %v1071_v43 = vld [vmem:[#allocation5 + $0x14] sm:$0xf0]  ;;  %v1068_v44 = vld [vmem:[#allocation5 + $0x4] sm:$0xf]  ;;  %v872_v45 = vld [vmem:[#allocation5 + $0x18] sm:$0xf0] }
  0x1a   :  { %428 = vmatpush.bf16.msra.mxu0 %v991_v16  ;;  %1118 = vmatpush.bf16.msra.mxu2 %v991_v16  ;;  %v1046_v46 = vld [vmem:[#allocation5 + $0x158] sm:$0xf]  ;;  %v1114_v47 = vld [vmem:[#allocation5 + $0x16c] sm:$0xf0]  ;;  %v1111_v48 = vld [vmem:[#allocation5 + $0x15c] sm:$0xf]  ;;  %v871_v50 = vor.u32 %v1071_v43, %v870_v42  ;;  %v875_v51 = vor.u32 %v1068_v44, %v872_v45 }
  0x1b   :  { %477 = vmatpush.bf16.msra.mxu1 %v995_v17  ;;  %1126 = vmatpush.bf16.msra.mxu3 %v995_v17  ;;  %v1048_v49 = vld [vmem:[#allocation5 + $0x170] sm:$0xf0]  ;;  %v1282_v52 = vld [vmem:[#allocation2] sm:$0xff]  ;;  %v1115_v55 = vld [vmem:[#allocation5 + $0x174] sm:$0xf0]  ;;  %v1047_v56 = vor.u32 %v1114_v47, %v1046_v46  ;;  %s1249_s2 = smov [#allocation8]  }
  0x1c   :  { %v1284_v53 = vld [vmem:[#allocation2 + $0x20] sm:$0xff]  ;;  %v1051_v57 = vor.u32 %v1111_v48, %v1048_v49  ;;  %v1056_v59 = vld [vmem:[#allocation5 + $0x178] sm:$0xf0]  ;;  %v1022_v60 = vld [vmem:[#allocation5 + $0x128] sm:$0xf]  ;;  %s820_s29 = sshll.u32 %s1249_s2, 4  ;;  %s821_s29 = int_to_ptr.vmem [resolvable:$true] %s820_s29 }
  0x1d   :  { %v1054_v54 = vld [vmem:[#allocation5 + $0x160] sm:$0xf]  ;;  %v1112_v58 = vld [vmem:[#allocation5 + $0x164] sm:$0xf]  ;;  %v1105_v62 = vld [vmem:[#allocation5 + $0x12c] sm:$0xf] }
  0x1e   :  { %429 = vmatpush.bf16.msra.mxu0 %v967_v22  ;;  %1119 = vmatpush.bf16.msra.mxu2 %v967_v22  ;;  %v1108_v61 = vld [vmem:[#allocation5 + $0x13c] sm:$0xf0]  ;;  %v1024_v63 = vld [vmem:[#allocation5 + $0x140] sm:$0xf0]  ;;  %v1055_v0 = vor.u32 %v1115_v55, %v1054_v54  ;;  %v1059_v1 = vor.u32 %v1112_v58, %v1056_v59  ;;  %v1030_v2 = vld [vmem:[#allocation5 + $0x130] sm:$0xf] }
  0x1f   :  { %478 = vmatpush.bf16.msra.mxu1 %v971_v23  ;;  %1127 = vmatpush.bf16.msra.mxu3 %v971_v23  ;;  %v1109_v3 = vld [vmem:[#allocation5 + $0x144] sm:$0xf0]  ;;  %v1023_v4 = vor.u32 %v1108_v61, %v1022_v60  ;;  %v1027_v5 = vor.u32 %v1105_v62, %v1024_v63  ;;  %v1106_v6 = vld [vmem:[#allocation5 + $0x134] sm:$0xf]  ;;  %v1032_v7 = vld [vmem:[#allocation5 + $0x148] sm:$0xf0] }
  0x20   :  { %v998_v8 = vld [vmem:[#allocation5 + $0xf8] sm:$0xf]  ;;  %v1102_v9 = vld [vmem:[#allocation5 + $0x10c] sm:$0xf0]  ;;  %v1099_v10 = vld [vmem:[#allocation5 + $0xfc] sm:$0xf]  ;;  %v1031_v12 = vor.u32 %v1109_v3, %v1030_v2  ;;  %v1035_v13 = vor.u32 %v1106_v6, %v1032_v7 }
  0x21   :  { %v1000_v11 = vld [vmem:[#allocation5 + $0x110] sm:$0xf0]  ;;  %v1006_v14 = vld [vmem:[#allocation5 + $0x100] sm:$0xf]  ;;  %v1103_v15 = vld [vmem:[#allocation5 + $0x114] sm:$0xf0]  ;;  %v999_v16 = vor.u32 %v1102_v9, %v998_v8 }
  0x22   :  { %430 = vmatpush.bf16.msra.mxu0 %v943_v28  ;;  %1120 = vmatpush.bf16.msra.mxu2 %v943_v28  ;;  %v1003_v17 = vor.u32 %v1099_v10, %v1000_v11  ;;  %v1100_v18 = vld [vmem:[#allocation5 + $0x104] sm:$0xf]  ;;  %v1008_v19 = vld [vmem:[#allocation5 + $0x118] sm:$0xf0]  ;;  %v974_v20 = vld [vmem:[#allocation5 + $0xc8] sm:$0xf]  ;;  %v1007_v24 = vor.u32 %v1103_v15, %v1006_v14 }
  0x23   :  { %479 = vmatpush.bf16.msra.mxu1 %v947_v29  ;;  %1128 = vmatpush.bf16.msra.mxu3 %v947_v29  ;;  %v1096_v21 = vld [vmem:[#allocation5 + $0xdc] sm:$0xf0]  ;;  %v1093_v22 = vld [vmem:[#allocation5 + $0xcc] sm:$0xf]  ;;  %v976_v23 = vld [vmem:[#allocation5 + $0xe0] sm:$0xf0]  ;;  %v1011_v25 = vor.u32 %v1100_v18, %v1008_v19 }
  0x24   :  { %v982_v26 = vld [vmem:[#allocation5 + $0xd0] sm:$0xf]  ;;  %v1097_v27 = vld [vmem:[#allocation5 + $0xe4] sm:$0xf0]  ;;  %v975_v28 = vor.u32 %v1096_v21, %v974_v20  ;;  %v979_v29 = vor.u32 %v1093_v22, %v976_v23  ;;  %v1094_v30 = vld [vmem:[#allocation5 + $0xd4] sm:$0xf] }
  0x25   :  { %v984_v31 = vld [vmem:[#allocation5 + $0xe8] sm:$0xf0]  ;;  %v950_v32 = vld [vmem:[#allocation5 + $0x98] sm:$0xf]  ;;  %v1090_v33 = vld [vmem:[#allocation5 + $0xac] sm:$0xf0]  ;;  %v983_v38 = vor.u32 %v1097_v27, %v982_v26 }
  0x26   :  { %431 = vmatpush.bf16.msra.mxu0 %v919_v34  ;;  %1121 = vmatpush.bf16.msra.mxu2 %v919_v34  ;;  %v1087_v34 = vld [vmem:[#allocation5 + $0x9c] sm:$0xf]  ;;  %v1290_v36 = vld [vmem:[#allocation2 + $0x8] sm:$0xff]  ;;  %v987_v39 = vor.u32 %v1094_v30, %v984_v31  ;;  %v951_v42 = vor.u32 %v1090_v33, %v950_v32  ;;  %v1088_v44 = vld [vmem:[#allocation5 + $0xa4] sm:$0xf]  ;;  %s822_s5 = sshll.u32 %s1455_s3, 4  ;;  %s823_s5 = int_to_ptr.hbm [resolvable:$true] %s822_s5 }
  0x27   :  { %480 = vmatpush.bf16.msra.mxu1 %v923_v35  ;;  %1129 = vmatpush.bf16.msra.mxu3 %v923_v35  ;;  %v952_v35 = vld [vmem:[#allocation5 + $0xb0] sm:$0xf0]  ;;  %v1292_v37 = vld [vmem:[#allocation2 + $0x28] sm:$0xff]  ;;  %v960_v45 = vld [vmem:[#allocation5 + $0xb8] sm:$0xf0] }
  0x28   :  { %v955_v43 = vor.u32 %v1087_v34, %v952_v35  ;;  %v926_v46 = vld [vmem:[#allocation5 + $0x68] sm:$0xf]  ;;  %v1084_v47 = vld [vmem:[#allocation5 + $0x7c] sm:$0xf0]  ;;  %v1081_v48 = vld [vmem:[#allocation5 + $0x6c] sm:$0xf] }
  0x29   :  { %v928_v49 = vld [vmem:[#allocation5 + $0x80] sm:$0xf0]  ;;  %v934_v54 = vld [vmem:[#allocation5 + $0x70] sm:$0xf]  ;;  %v927_v55 = vor.u32 %v1084_v47, %v926_v46  ;;  %v1082_v58 = vld [vmem:[#allocation5 + $0x74] sm:$0xf] }
  0x2a   :  { %432 = vmatpush.bf16.msra.mxu0 %v895_v40  ;;  %1122 = vmatpush.bf16.msra.mxu2 %v895_v40  ;;  %v958_v40 = vld [vmem:[#allocation5 + $0xa0] sm:$0xf]  ;;  %v936_v59 = vld [vmem:[#allocation5 + $0x88] sm:$0xf0]  ;;  %v902_v60 = vld [vmem:[#allocation5 + $0x38] sm:$0xf] }
  0x2b   :  { %481 = vmatpush.bf16.msra.mxu1 %v899_v41  ;;  %1130 = vmatpush.bf16.msra.mxu3 %v899_v41  ;;  %v1091_v41 = vld [vmem:[#allocation5 + $0xb4] sm:$0xf0]  ;;  %v1078_v61 = vld [vmem:[#allocation5 + $0x4c] sm:$0xf0]  ;;  %v1075_v62 = vld [vmem:[#allocation5 + $0x3c] sm:$0xf] }
  0x2c   :  { %v910_v2 = vld [vmem:[#allocation5 + $0x40] sm:$0xf]  ;;  %v1079_v3 = vld [vmem:[#allocation5 + $0x54] sm:$0xf0]  ;;  %v1076_v6 = vld [vmem:[#allocation5 + $0x44] sm:$0xf] }
  0x2d   :  { %v912_v7 = vld [vmem:[#allocation5 + $0x58] sm:$0xf0]  ;;  %v878_v8 = vld [vmem:[#allocation5 + $0x8] sm:$0xf]  ;;  %v1072_v9 = vld [vmem:[#allocation5 + $0x1c] sm:$0xf0] }
  0x2e   :  { %433 = vmatpush.bf16.msra.mxu0 %v871_v50  ;;  %1123 = vmatpush.bf16.msra.mxu2 %v871_v50  ;;  %v959_v50 = vor.u32 %v1091_v41, %v958_v40  ;;  %v1069_v10 = vld [vmem:[#allocation5 + $0xc] sm:$0xf]  ;;  %v880_v11 = vld [vmem:[#allocation5 + $0x20] sm:$0xf0]  ;;  %v886_v14 = vld [vmem:[#allocation5 + $0x10] sm:$0xf]  ;;  %v879_v15 = vor.u32 %v1072_v9, %v878_v8 }
  0x2f   :  { %482 = vmatpush.bf16.msra.mxu1 %v875_v51  ;;  %1131 = vmatpush.bf16.msra.mxu3 %v875_v51  ;;  %v963_v51 = vor.u32 %v1088_v44, %v960_v45  ;;  %v1070_v18 = vld [vmem:[#allocation5 + $0x14] sm:$0xf]  ;;  %v888_v19 = vld [vmem:[#allocation5 + $0x28] sm:$0xf0]  ;;  %v1314_v26 = vld [vmem:[#allocation7] sm:$0x3f] }
  0x30   :  { %v891_v21 = vor.u32 %v1070_v18, %v888_v19  ;;  %v1062_v22 = vld [vmem:[#allocation2 + $0x10] sm:$0xff]  ;;  %v1320_v27 = vperm.slane %v1314_v26, 1 }
  0x31   :  { %434 = vmatmul.bf16.vlgmr.msra.gmra.mxu0 %v1282_v52  ;;  %454 = vmatmul.bf16.vlgmr.msra.gmra.mxu2 %v1284_v53  ;;  %v1298_v23 = vld [vmem:[#allocation2 + $0x30] sm:$0xff] }
  0x32   :  { %524 = vmatpush.bf16.msrb.mxu2 %v1047_v56  ;;  %483 = vmatmul.bf16.vlgmr.msra.gmra.mxu1 %v1282_v52  ;;  %v931_v56 = vor.u32 %v1081_v48, %v928_v49 }
  0x33   :  { %573 = vmatpush.bf16.msrb.mxu3 %v1051_v57  ;;  %622 = vmatpush.bf16.msrb.mxu0 %v1055_v0  ;;  %v1085_v57 = vld [vmem:[#allocation5 + $0x84] sm:$0xf0]  ;;  %v939_v0 = vor.u32 %v1082_v58, %v936_v59 }
  0x34   :  { %503 = vmatmul.bf16.vlgmr.msra.gmra.mxu3 %v1284_v53  ;;  %671 = vmatpush.bf16.msrb.mxu1 %v1059_v1  ;;  %v935_v63 = vor.u32 %v1085_v57, %v934_v54  ;;  %v904_v1 = vld [vmem:[#allocation5 + $0x50] sm:$0xf0] }
  0x36   :  { %525 = vmatpush.bf16.msrb.mxu2 %v1023_v4  ;;  %v903_v4 = vor.u32 %v1078_v61, %v902_v60 }
  0x37   :  { %574 = vmatpush.bf16.msrb.mxu3 %v1027_v5  ;;  %623 = vmatpush.bf16.msrb.mxu0 %v1031_v12  ;;  %v907_v5 = vor.u32 %v1075_v62, %v904_v1  ;;  %v911_v12 = vor.u32 %v1079_v3, %v910_v2 }
  0x38   :  { %672 = vmatpush.bf16.msrb.mxu1 %v1035_v13  ;;  %v915_v13 = vor.u32 %v1076_v6, %v912_v7 }
  0x3a   :  { %526 = vmatpush.bf16.msrb.mxu2 %v999_v16  ;;  %v883_v16 = vor.u32 %v1069_v10, %v880_v11 }
  0x3b   :  { %575 = vmatpush.bf16.msrb.mxu3 %v1003_v17  ;;  %624 = vmatpush.bf16.msrb.mxu0 %v1007_v24  ;;  %v1073_v17 = vld [vmem:[#allocation5 + $0x24] sm:$0xf0]  ;;  %v1063_v24 = vld [vmem:[#allocation2 + $0x18] sm:$0xff] }
  0x3c   :  { %673 = vmatpush.bf16.msrb.mxu1 %v1011_v25  ;;  %v887_v20 = vor.u32 %v1073_v17, %v886_v14  ;;  %v1302_v25 = vld [vmem:[#allocation2 + $0x38] sm:$0xff] }
  0x3e   :  { %527 = vmatpush.bf16.msrb.mxu2 %v975_v28 }
  0x3f   :  { %576 = vmatpush.bf16.msrb.mxu3 %v979_v29  ;;  %625 = vmatpush.bf16.msrb.mxu0 %v983_v38 }
  0x40   :  { %674 = vmatpush.bf16.msrb.mxu1 %v987_v39 }
  0x41   :  { %439 = vmatmul.bf16.gmra.mxu0 %v1290_v36  ;;  %459 = vmatmul.bf16.gmra.mxu2 %v1292_v37 }
  0x42   :  { %528 = vmatpush.bf16.msrb.mxu2 %v951_v42  ;;  %488 = vmatmul.bf16.gmra.mxu1 %v1290_v36 }
  0x43   :  { %577 = vmatpush.bf16.msrb.mxu3 %v955_v43  ;;  %626 = vmatpush.bf16.msrb.mxu0 %v959_v50 }
  0x44   :  { %508 = vmatmul.bf16.gmra.mxu3 %v1292_v37  ;;  %675 = vmatpush.bf16.msrb.mxu1 %v963_v51 }
  0x46   :  { %529 = vmatpush.bf16.msrb.mxu2 %v927_v55 }
  0x47   :  { %578 = vmatpush.bf16.msrb.mxu3 %v931_v56  ;;  %627 = vmatpush.bf16.msrb.mxu0 %v935_v63 }
  0x48   :  { %676 = vmatpush.bf16.msrb.mxu1 %v939_v0 }
  0x4a   :  { %530 = vmatpush.bf16.msrb.mxu2 %v903_v4 }
  0x4b   :  { %579 = vmatpush.bf16.msrb.mxu3 %v907_v5  ;;  %628 = vmatpush.bf16.msrb.mxu0 %v911_v12 }
  0x4c   :  { %677 = vmatpush.bf16.msrb.mxu1 %v915_v13 }
  0x4e   :  { %531 = vmatpush.bf16.msrb.mxu2 %v879_v15 }
  0x4f   :  { %580 = vmatpush.bf16.msrb.mxu3 %v883_v16  ;;  %629 = vmatpush.bf16.msrb.mxu0 %v887_v20 }
  0x50   :  { %678 = vmatpush.bf16.msrb.mxu1 %v891_v21 }
  0x51   :  { %444 = vmatmul.bf16.gmra.mxu0 %v1062_v22  ;;  %464 = vmatmul.bf16.gmra.mxu2 %v1298_v23 }
  0x52   :  { %493 = vmatmul.bf16.gmra.mxu1 %v1062_v22 }
  0x54   :  { %513 = vmatmul.bf16.gmra.mxu3 %v1298_v23 }
  0x61   :  { %449 = vmatmul.bf16.gmra.mxu0 %v1063_v24  ;;  %469 = vmatmul.bf16.gmra.mxu2 %v1302_v25 }
  0x62   :  { %498 = vmatmul.bf16.gmra.mxu1 %v1063_v24 }
  0x64   :  { %518 = vmatmul.bf16.gmra.mxu3 %v1302_v25 }
  0x71   :  { %532 = vmatmul.bf16.vlgmr.msrb.gmra.mxu2 %v1282_v52  ;;  %630 = vmatmul.bf16.vlgmr.msrb.gmra.mxu0 %v1282_v52 }
  0x72   :  { %679 = vmatmul.bf16.vlgmr.msrb.gmra.mxu1 %v1282_v52 }
  0x74   :  { %581 = vmatmul.bf16.vlgmr.msrb.gmra.mxu3 %v1282_v52  ;;  %v1317_v52 = vperm.slane %v1314_v26, 0 }
  0x81   :  { %537 = vmatmul.bf16.gmra.mxu2 %v1290_v36  ;;  %635 = vmatmul.bf16.gmra.mxu0 %v1290_v36 }
  0x82   :  { %684 = vmatmul.bf16.gmra.mxu1 %v1290_v36 }
  0x84   :  { %586 = vmatmul.bf16.gmra.mxu3 %v1290_v36 }
  0x91   :  { %542 = vmatmul.bf16.gmra.mxu2 %v1062_v22  ;;  %640 = vmatmul.bf16.gmra.mxu0 %v1062_v22 }
  0x92   :  { %689 = vmatmul.bf16.gmra.mxu1 %v1062_v22 }
  0x94   :  { %591 = vmatmul.bf16.gmra.mxu3 %v1062_v22 }
  0xa1   :  { %547 = vmatmul.bf16.gmra.mxu2 %v1063_v24  ;;  %645 = vmatmul.bf16.gmra.mxu0 %v1063_v24 }
  0xa2   :  { %694 = vmatmul.bf16.gmra.mxu1 %v1063_v24 }
  0xa4   :  { %596 = vmatmul.bf16.gmra.mxu3 %v1063_v24 }
  0xae   :  { %v435_v28 = vpop.f32.mrf.mxu0 }
  0xaf   :  { %v436_v29 = vadd.f32 %v435_v28, %v1317_v52  ;;  %v484_v30 = vpop.f32.mrf.mxu1 }
  0xb0   :  { %v485_v31 = vadd.f32 %v484_v30, %v1320_v27 }
  0xb1   :  { %552 = vmatmul.bf16.gmra.mxu2 %v1284_v53  ;;  %650 = vmatmul.bf16.gmra.mxu0 %v1284_v53 }
  0xb2   :  { %v720_v32 = vpack.c.bf16 %v485_v31, %v436_v29  ;;  %699 = vmatmul.bf16.gmra.mxu1 %v1284_v53 }
  0xb4   :  { %601 = vmatmul.bf16.gmra.mxu3 %v1284_v53  ;;  %768 = vst [vmem:[#allocation8] sm:$0xff] %v720_v32  ;;  %v455_v33 = vpop.f32.mrf.mxu2 }
  0xb5   :  { %v456_v34 = vadd.f32 %v455_v33, %v1317_v52 }
  0xb6   :  { %v437_v38 = vpop.f32.mrf.mxu0 }
  0xb7   :  { %v504_v35 = vpop.f32.mrf.mxu3  ;;  %v438_v39 = vadd.f32 %v437_v38, %v1317_v52  ;;  %v486_v40 = vpop.f32.mrf.mxu1 }
  0xb8   :  { %v505_v36 = vadd.f32 %v504_v35, %v1320_v27  ;;  %v487_v42 = vadd.f32 %v486_v40, %v1320_v27 }
  0xba   :  { %v744_v41 = vpack.c.bf16 %v505_v36, %v456_v34  ;;  %v723_v43 = vpack.c.bf16 %v487_v42, %v438_v39 }
  0xbc   :  { %792 = vst [vmem:[#allocation8 + $0xc0] sm:$0xff] %v744_v41  ;;  %v457_v44 = vpop.f32.mrf.mxu2 }
  0xbd   :  { %771 = vst [vmem:[#allocation8 + $0x18] sm:$0xff] %v723_v43  ;;  %v458_v53 = vadd.f32 %v457_v44, %v1317_v52  ;;  %v1369_v44 = vperm.slane %v1314_v26, 4 }
  0xbe   :  { %v440_v47 = vpop.f32.mrf.mxu0 }
  0xbf   :  { %v506_v45 = vpop.f32.mrf.mxu3  ;;  %v441_v48 = vadd.f32 %v440_v47, %v1317_v52  ;;  %v489_v49 = vpop.f32.mrf.mxu1 }
  0xc0   :  { %v507_v46 = vadd.f32 %v506_v45, %v1320_v27  ;;  %v490_v51 = vadd.f32 %v489_v49, %v1320_v27 }
  0xc1   :  { %557 = vmatmul.bf16.gmra.mxu2 %v1292_v37  ;;  %655 = vmatmul.bf16.gmra.mxu0 %v1292_v37 }
  0xc2   :  { %v747_v50 = vpack.c.bf16 %v507_v46, %v458_v53  ;;  %v726_v54 = vpack.c.bf16 %v490_v51, %v441_v48  ;;  %704 = vmatmul.bf16.gmra.mxu1 %v1292_v37  ;;  %v1372_v53 = vperm.slane %v1314_v26, 5 }
  0xc4   :  { %795 = vst [vmem:[#allocation8 + $0xd8] sm:$0xff] %v747_v50  ;;  %606 = vmatmul.bf16.gmra.mxu3 %v1292_v37  ;;  %v460_v55 = vpop.f32.mrf.mxu2 }
  0xc5   :  { %774 = vst [vmem:[#allocation8 + $0x30] sm:$0xff] %v726_v54  ;;  %v461_v56 = vadd.f32 %v460_v55, %v1317_v52  ;;  %v1379_v55 = vperm.slane %v1314_v26, 2 }
  0xc6   :  { %v442_v59 = vpop.f32.mrf.mxu0 }
  0xc7   :  { %v509_v57 = vpop.f32.mrf.mxu3  ;;  %v443_v60 = vadd.f32 %v442_v59, %v1317_v52  ;;  %v491_v61 = vpop.f32.mrf.mxu1 }
  0xc8   :  { %v510_v58 = vadd.f32 %v509_v57, %v1320_v27  ;;  %v492_v63 = vadd.f32 %v491_v61, %v1320_v27  ;;  %v1382_v57 = vperm.slane %v1314_v26, 3 }
  0xca   :  { %v750_v62 = vpack.c.bf16 %v510_v58, %v461_v56  ;;  %v729_v0 = vpack.c.bf16 %v492_v63, %v443_v60 }
  0xcc   :  { %798 = vst [vmem:[#allocation8 + $0xf0] sm:$0xff] %v750_v62  ;;  %v462_v1 = vpop.f32.mrf.mxu2 }
  0xcd   :  { %777 = vst [vmem:[#allocation8 + $0x48] sm:$0xff] %v729_v0  ;;  %v463_v37 = vadd.f32 %v462_v1, %v1317_v52 }
  0xce   :  { %v445_v4 = vpop.f32.mrf.mxu0 }
  0xcf   :  { %v511_v2 = vpop.f32.mrf.mxu3  ;;  %v446_v5 = vadd.f32 %v445_v4, %v1317_v52  ;;  %v494_v6 = vpop.f32.mrf.mxu1 }
  0xd0   :  { %v512_v3 = vadd.f32 %v511_v2, %v1320_v27  ;;  %v495_v8 = vadd.f32 %v494_v6, %v1320_v27 }
  0xd1   :  { %562 = vmatmul.bf16.gmra.mxu2 %v1298_v23  ;;  %660 = vmatmul.bf16.gmra.mxu0 %v1298_v23 }
  0xd2   :  { %v753_v7 = vpack.c.bf16 %v512_v3, %v463_v37  ;;  %v732_v9 = vpack.c.bf16 %v495_v8, %v446_v5  ;;  %709 = vmatmul.bf16.gmra.mxu1 %v1298_v23 }
  0xd4   :  { %801 = vst [vmem:[#allocation8 + $0x108] sm:$0xff] %v753_v7  ;;  %611 = vmatmul.bf16.gmra.mxu3 %v1298_v23  ;;  %v465_v10 = vpop.f32.mrf.mxu2 }
  0xd5   :  { %780 = vst [vmem:[#allocation8 + $0x60] sm:$0xff] %v732_v9  ;;  %v466_v11 = vadd.f32 %v465_v10, %v1317_v52 }
  0xd6   :  { %v447_v14 = vpop.f32.mrf.mxu0 }
  0xd7   :  { %v514_v12 = vpop.f32.mrf.mxu3  ;;  %v448_v15 = vadd.f32 %v447_v14, %v1317_v52  ;;  %v496_v16 = vpop.f32.mrf.mxu1 }
  0xd8   :  { %v515_v13 = vadd.f32 %v514_v12, %v1320_v27  ;;  %v497_v18 = vadd.f32 %v496_v16, %v1320_v27 }
  0xda   :  { %v756_v17 = vpack.c.bf16 %v515_v13, %v466_v11  ;;  %v735_v19 = vpack.c.bf16 %v497_v18, %v448_v15 }
  0xdc   :  { %804 = vst [vmem:[#allocation8 + $0x120] sm:$0xff] %v756_v17  ;;  %v467_v20 = vpop.f32.mrf.mxu2 }
  0xdd   :  { %783 = vst [vmem:[#allocation8 + $0x78] sm:$0xff] %v735_v19  ;;  %v468_v21 = vadd.f32 %v467_v20, %v1317_v52 }
  0xde   :  { %v450_v24 = vpop.f32.mrf.mxu0 }
  0xdf   :  { %v516_v22 = vpop.f32.mrf.mxu3  ;;  %v451_v28 = vadd.f32 %v450_v24, %v1317_v52  ;;  %v499_v29 = vpop.f32.mrf.mxu1 }
  0xe0   :  { %v517_v23 = vadd.f32 %v516_v22, %v1320_v27  ;;  %v500_v31 = vadd.f32 %v499_v29, %v1320_v27 }
  0xe1   :  { %567 = vmatmul.bf16.gmra.mxu2 %v1302_v25  ;;  %665 = vmatmul.bf16.gmra.mxu0 %v1302_v25 }
  0xe2   :  { %v759_v30 = vpack.c.bf16 %v517_v23, %v468_v21  ;;  %v738_v32 = vpack.c.bf16 %v500_v31, %v451_v28  ;;  %714 = vmatmul.bf16.gmra.mxu1 %v1302_v25 }
  0xe4   :  { %807 = vst [vmem:[#allocation8 + $0x138] sm:$0xff] %v759_v30  ;;  %616 = vmatmul.bf16.gmra.mxu3 %v1302_v25  ;;  %v470_v33 = vpop.f32.mrf.mxu2 }
  0xe5   :  { %786 = vst [vmem:[#allocation8 + $0x90] sm:$0xff] %v738_v32  ;;  %v471_v34 = vadd.f32 %v470_v33, %v1317_v52 }
  0xe6   :  { %v452_v38 = vpop.f32.mrf.mxu0 }
  0xe7   :  { %v519_v35 = vpop.f32.mrf.mxu3  ;;  %v453_v39 = vadd.f32 %v452_v38, %v1317_v52  ;;  %v501_v40 = vpop.f32.mrf.mxu1 }
  0xe8   :  { %v520_v36 = vadd.f32 %v519_v35, %v1320_v27  ;;  %v502_v42 = vadd.f32 %v501_v40, %v1320_v27 }
  0xea   :  { %v762_v41 = vpack.c.bf16 %v520_v36, %v471_v34  ;;  %v741_v43 = vpack.c.bf16 %v502_v42, %v453_v39 }
  0xec   :  { %810 = vst [vmem:[#allocation8 + $0x150] sm:$0xff] %v762_v41  ;;  %v472_v25 = vpop.f32.mrf.mxu2 }
  0xed   :  { %789 = vst [vmem:[#allocation8 + $0xa8] sm:$0xff] %v741_v43  ;;  %v473_v45 = vadd.f32 %v472_v25, %v1317_v52 }
  0xee   :  { %v631_v48 = vpop.f32.mrf.mxu0 }
  0xef   :  { %v521_v46 = vpop.f32.mrf.mxu3  ;;  %v632_v49 = vadd.f32 %v631_v48, %v1369_v44  ;;  %v680_v50 = vpop.f32.mrf.mxu1 }
  0xf0   :  { %v522_v47 = vadd.f32 %v521_v46, %v1320_v27  ;;  %v681_v54 = vadd.f32 %v680_v50, %v1372_v53 }
  0xf2   :  { %v765_v51 = vpack.c.bf16 %v522_v47, %v473_v45  ;;  %v722_v56 = vpack.c.bf16 %v681_v54, %v632_v49 }
  0xf4   :  { %813 = vst [vmem:[#allocation8 + $0x168] sm:$0xff] %v765_v51  ;;  %v533_v52 = vpop.f32.mrf.mxu2 }
  0xf5   :  { %770 = vst [vmem:[#allocation8 + $0x10] sm:$0xff] %v722_v56  ;;  %v534_v58 = vadd.f32 %v533_v52, %v1379_v55 }
  0xf6   :  { %v633_v60 = vpop.f32.mrf.mxu0 }
  0xf7   :  { %v582_v27 = vpop.f32.mrf.mxu3  ;;  %v634_v61 = vadd.f32 %v633_v60, %v1369_v44  ;;  %v682_v62 = vpop.f32.mrf.mxu1 }
  0xf8   :  { %v583_v59 = vadd.f32 %v582_v27, %v1382_v57  ;;  %v683_v0 = vadd.f32 %v682_v62, %v1372_v53 }
  0xfa   :  { %v721_v63 = vpack.c.bf16 %v583_v59, %v534_v58  ;;  %v725_v1 = vpack.c.bf16 %v683_v0, %v634_v61 }
  0xfc   :  { %769 = vst [vmem:[#allocation8 + $0x8] sm:$0xff] %v721_v63  ;;  %v535_v37 = vpop.f32.mrf.mxu2 }
  0xfd   :  { %773 = vst [vmem:[#allocation8 + $0x28] sm:$0xff] %v725_v1  ;;  %v536_v26 = vadd.f32 %v535_v37, %v1379_v55 }
  0xfe   :  { %v636_v4 = vpop.f32.mrf.mxu0 }
  0xff   :  { %v584_v2 = vpop.f32.mrf.mxu3  ;;  %v637_v5 = vadd.f32 %v636_v4, %v1369_v44  ;;  %v685_v6 = vpop.f32.mrf.mxu1 }
 0x100   :  { %v585_v3 = vadd.f32 %v584_v2, %v1382_v57  ;;  %v686_v8 = vadd.f32 %v685_v6, %v1372_v53 }
 0x102   :  { %v724_v7 = vpack.c.bf16 %v585_v3, %v536_v26  ;;  %v728_v9 = vpack.c.bf16 %v686_v8, %v637_v5 }
 0x104   :  { %772 = vst [vmem:[#allocation8 + $0x20] sm:$0xff] %v724_v7  ;;  %v538_v10 = vpop.f32.mrf.mxu2 }
 0x105   :  { %776 = vst [vmem:[#allocation8 + $0x40] sm:$0xff] %v728_v9  ;;  %v539_v11 = vadd.f32 %v538_v10, %v1379_v55 }
 0x106   :  { %v638_v14 = vpop.f32.mrf.mxu0 }
 0x107   :  { %v587_v12 = vpop.f32.mrf.mxu3  ;;  %v639_v15 = vadd.f32 %v638_v14, %v1369_v44  ;;  %v687_v16 = vpop.f32.mrf.mxu1 }
 0x108   :  { %v588_v13 = vadd.f32 %v587_v12, %v1382_v57  ;;  %v688_v18 = vadd.f32 %v687_v16, %v1372_v53 }
 0x10a   :  { %v727_v17 = vpack.c.bf16 %v588_v13, %v539_v11  ;;  %v731_v19 = vpack.c.bf16 %v688_v18, %v639_v15 }
 0x10c   :  { %775 = vst [vmem:[#allocation8 + $0x38] sm:$0xff] %v727_v17  ;;  %v540_v20 = vpop.f32.mrf.mxu2 }
 0x10d   :  { %779 = vst [vmem:[#allocation8 + $0x58] sm:$0xff] %v731_v19  ;;  %v541_v21 = vadd.f32 %v540_v20, %v1379_v55 }
 0x10e   :  { %v641_v24 = vpop.f32.mrf.mxu0 }
 0x10f   :  { %v589_v22 = vpop.f32.mrf.mxu3  ;;  %v642_v28 = vadd.f32 %v641_v24, %v1369_v44  ;;  %v690_v29 = vpop.f32.mrf.mxu1 }
 0x110   :  { %v590_v23 = vadd.f32 %v589_v22, %v1382_v57  ;;  %v691_v31 = vadd.f32 %v690_v29, %v1372_v53 }
 0x112   :  { %v730_v30 = vpack.c.bf16 %v590_v23, %v541_v21  ;;  %v734_v32 = vpack.c.bf16 %v691_v31, %v642_v28 }
 0x114   :  { %778 = vst [vmem:[#allocation8 + $0x50] sm:$0xff] %v730_v30  ;;  %v543_v33 = vpop.f32.mrf.mxu2 }
 0x115   :  { %782 = vst [vmem:[#allocation8 + $0x70] sm:$0xff] %v734_v32  ;;  %v544_v34 = vadd.f32 %v543_v33, %v1379_v55 }
 0x116   :  { %v643_v38 = vpop.f32.mrf.mxu0 }
 0x117   :  { %v592_v35 = vpop.f32.mrf.mxu3  ;;  %v644_v39 = vadd.f32 %v643_v38, %v1369_v44  ;;  %v692_v40 = vpop.f32.mrf.mxu1 }
 0x118   :  { %v593_v36 = vadd.f32 %v592_v35, %v1382_v57  ;;  %v693_v42 = vadd.f32 %v692_v40, %v1372_v53 }
 0x11a   :  { %v733_v41 = vpack.c.bf16 %v593_v36, %v544_v34  ;;  %v737_v43 = vpack.c.bf16 %v693_v42, %v644_v39 }
 0x11c   :  { %781 = vst [vmem:[#allocation8 + $0x68] sm:$0xff] %v733_v41  ;;  %v545_v25 = vpop.f32.mrf.mxu2 }
 0x11d   :  { %785 = vst [vmem:[#allocation8 + $0x88] sm:$0xff] %v737_v43  ;;  %v546_v45 = vadd.f32 %v545_v25, %v1379_v55 }
 0x11e   :  { %v646_v48 = vpop.f32.mrf.mxu0 }
 0x11f   :  { %v594_v46 = vpop.f32.mrf.mxu3  ;;  %v647_v49 = vadd.f32 %v646_v48, %v1369_v44  ;;  %v695_v50 = vpop.f32.mrf.mxu1 }
 0x120   :  { %v595_v47 = vadd.f32 %v594_v46, %v1382_v57  ;;  %v696_v54 = vadd.f32 %v695_v50, %v1372_v53 }
 0x122   :  { %v736_v51 = vpack.c.bf16 %v595_v47, %v546_v45  ;;  %v740_v56 = vpack.c.bf16 %v696_v54, %v647_v49 }
 0x124   :  { %784 = vst [vmem:[#allocation8 + $0x80] sm:$0xff] %v736_v51  ;;  %v548_v52 = vpop.f32.mrf.mxu2 }
 0x125   :  { %788 = vst [vmem:[#allocation8 + $0xa0] sm:$0xff] %v740_v56  ;;  %v549_v58 = vadd.f32 %v548_v52, %v1379_v55 }
 0x126   :  { %v648_v60 = vpop.f32.mrf.mxu0 }
 0x127   :  { %v597_v27 = vpop.f32.mrf.mxu3  ;;  %v649_v61 = vadd.f32 %v648_v60, %v1369_v44  ;;  %v697_v62 = vpop.f32.mrf.mxu1 }
 0x128   :  { %v598_v59 = vadd.f32 %v597_v27, %v1382_v57  ;;  %v698_v0 = vadd.f32 %v697_v62, %v1372_v53 }
 0x12a   :  { %v739_v63 = vpack.c.bf16 %v598_v59, %v549_v58  ;;  %v743_v1 = vpack.c.bf16 %v698_v0, %v649_v61 }
 0x12c   :  { %787 = vst [vmem:[#allocation8 + $0x98] sm:$0xff] %v739_v63  ;;  %v550_v37 = vpop.f32.mrf.mxu2 }
 0x12d   :  { %791 = vst [vmem:[#allocation8 + $0xb8] sm:$0xff] %v743_v1  ;;  %v551_v26 = vadd.f32 %v550_v37, %v1379_v55 }
 0x12e   :  { %v651_v4 = vpop.f32.mrf.mxu0 }
 0x12f   :  { %v599_v2 = vpop.f32.mrf.mxu3  ;;  %v652_v5 = vadd.f32 %v651_v4, %v1369_v44  ;;  %v700_v6 = vpop.f32.mrf.mxu1 }
 0x130   :  { %v600_v3 = vadd.f32 %v599_v2, %v1382_v57  ;;  %v701_v8 = vadd.f32 %v700_v6, %v1372_v53 }
 0x132   :  { %v742_v7 = vpack.c.bf16 %v600_v3, %v551_v26  ;;  %v746_v9 = vpack.c.bf16 %v701_v8, %v652_v5 }
 0x134   :  { %790 = vst [vmem:[#allocation8 + $0xb0] sm:$0xff] %v742_v7  ;;  %v553_v10 = vpop.f32.mrf.mxu2 }
 0x135   :  { %794 = vst [vmem:[#allocation8 + $0xd0] sm:$0xff] %v746_v9  ;;  %v554_v11 = vadd.f32 %v553_v10, %v1379_v55 }
 0x136   :  { %v653_v14 = vpop.f32.mrf.mxu0 }
 0x137   :  { %v602_v12 = vpop.f32.mrf.mxu3  ;;  %v654_v15 = vadd.f32 %v653_v14, %v1369_v44  ;;  %v702_v16 = vpop.f32.mrf.mxu1 }
 0x138   :  { %v603_v13 = vadd.f32 %v602_v12, %v1382_v57  ;;  %v703_v18 = vadd.f32 %v702_v16, %v1372_v53 }
 0x13a   :  { %v745_v17 = vpack.c.bf16 %v603_v13, %v554_v11  ;;  %v749_v19 = vpack.c.bf16 %v703_v18, %v654_v15 }
 0x13c   :  { %793 = vst [vmem:[#allocation8 + $0xc8] sm:$0xff] %v745_v17  ;;  %v555_v20 = vpop.f32.mrf.mxu2 }
 0x13d   :  { %797 = vst [vmem:[#allocation8 + $0xe8] sm:$0xff] %v749_v19  ;;  %v556_v21 = vadd.f32 %v555_v20, %v1379_v55 }
 0x13e   :  { %v656_v24 = vpop.f32.mrf.mxu0 }
 0x13f   :  { %v604_v22 = vpop.f32.mrf.mxu3  ;;  %v657_v28 = vadd.f32 %v656_v24, %v1369_v44  ;;  %v705_v29 = vpop.f32.mrf.mxu1 }
 0x140   :  { %v605_v23 = vadd.f32 %v604_v22, %v1382_v57  ;;  %v706_v31 = vadd.f32 %v705_v29, %v1372_v53 }
 0x142   :  { %v748_v30 = vpack.c.bf16 %v605_v23, %v556_v21  ;;  %v752_v32 = vpack.c.bf16 %v706_v31, %v657_v28 }
 0x144   :  { %796 = vst [vmem:[#allocation8 + $0xe0] sm:$0xff] %v748_v30  ;;  %v558_v33 = vpop.f32.mrf.mxu2 }
 0x145   :  { %800 = vst [vmem:[#allocation8 + $0x100] sm:$0xff] %v752_v32  ;;  %v559_v34 = vadd.f32 %v558_v33, %v1379_v55 }
 0x146   :  { %v658_v38 = vpop.f32.mrf.mxu0 }
 0x147   :  { %v607_v35 = vpop.f32.mrf.mxu3  ;;  %v659_v39 = vadd.f32 %v658_v38, %v1369_v44  ;;  %v707_v40 = vpop.f32.mrf.mxu1 }
 0x148   :  { %v608_v36 = vadd.f32 %v607_v35, %v1382_v57  ;;  %v708_v42 = vadd.f32 %v707_v40, %v1372_v53 }
 0x14a   :  { %v751_v41 = vpack.c.bf16 %v608_v36, %v559_v34  ;;  %v755_v43 = vpack.c.bf16 %v708_v42, %v659_v39 }
 0x14c   :  { %799 = vst [vmem:[#allocation8 + $0xf8] sm:$0xff] %v751_v41  ;;  %v560_v25 = vpop.f32.mrf.mxu2 }
 0x14d   :  { %803 = vst [vmem:[#allocation8 + $0x118] sm:$0xff] %v755_v43  ;;  %v561_v45 = vadd.f32 %v560_v25, %v1379_v55 }
 0x14e   :  { %v661_v48 = vpop.f32.mrf.mxu0 }
 0x14f   :  { %v609_v46 = vpop.f32.mrf.mxu3  ;;  %v662_v49 = vadd.f32 %v661_v48, %v1369_v44  ;;  %v710_v50 = vpop.f32.mrf.mxu1 }
 0x150   :  { %v610_v47 = vadd.f32 %v609_v46, %v1382_v57  ;;  %v711_v54 = vadd.f32 %v710_v50, %v1372_v53 }
 0x152   :  { %v754_v51 = vpack.c.bf16 %v610_v47, %v561_v45  ;;  %v758_v56 = vpack.c.bf16 %v711_v54, %v662_v49 }
 0x154   :  { %802 = vst [vmem:[#allocation8 + $0x110] sm:$0xff] %v754_v51  ;;  %v563_v52 = vpop.f32.mrf.mxu2 }
 0x155   :  { %806 = vst [vmem:[#allocation8 + $0x130] sm:$0xff] %v758_v56  ;;  %v564_v58 = vadd.f32 %v563_v52, %v1379_v55 }
 0x156   :  { %v663_v60 = vpop.f32.mrf.mxu0 }
 0x157   :  { %v612_v27 = vpop.f32.mrf.mxu3  ;;  %v664_v61 = vadd.f32 %v663_v60, %v1369_v44  ;;  %v712_v62 = vpop.f32.mrf.mxu1 }
 0x158   :  { %v613_v59 = vadd.f32 %v612_v27, %v1382_v57  ;;  %v713_v0 = vadd.f32 %v712_v62, %v1372_v53 }
 0x15a   :  { %v757_v63 = vpack.c.bf16 %v613_v59, %v564_v58  ;;  %v761_v1 = vpack.c.bf16 %v713_v0, %v664_v61 }
 0x15c   :  { %805 = vst [vmem:[#allocation8 + $0x128] sm:$0xff] %v757_v63  ;;  %v565_v37 = vpop.f32.mrf.mxu2 }
 0x15d   :  { %809 = vst [vmem:[#allocation8 + $0x148] sm:$0xff] %v761_v1  ;;  %v566_v26 = vadd.f32 %v565_v37, %v1379_v55 }
 0x15e   :  { %v666_v4 = vpop.f32.mrf.mxu0 }
 0x15f   :  { %v614_v2 = vpop.f32.mrf.mxu3  ;;  %v667_v5 = vadd.f32 %v666_v4, %v1369_v44  ;;  %v715_v6 = vpop.f32.mrf.mxu1 }
 0x160   :  { %v615_v3 = vadd.f32 %v614_v2, %v1382_v57  ;;  %v716_v8 = vadd.f32 %v715_v6, %v1372_v53 }
 0x162   :  { %v760_v7 = vpack.c.bf16 %v615_v3, %v566_v26  ;;  %v764_v9 = vpack.c.bf16 %v716_v8, %v667_v5 }
 0x164   :  { %808 = vst [vmem:[#allocation8 + $0x140] sm:$0xff] %v760_v7  ;;  %v568_v10 = vpop.f32.mrf.mxu2 }
 0x165   :  { %812 = vst [vmem:[#allocation8 + $0x160] sm:$0xff] %v764_v9  ;;  %v569_v11 = vadd.f32 %v568_v10, %v1379_v55 }
 0x166   :  { %v668_v14 = vpop.f32.mrf.mxu0 }
 0x167   :  { %v617_v12 = vpop.f32.mrf.mxu3  ;;  %v669_v15 = vadd.f32 %v668_v14, %v1369_v44  ;;  %v717_v16 = vpop.f32.mrf.mxu1 }
 0x168   :  { %v618_v13 = vadd.f32 %v617_v12, %v1382_v57  ;;  %v718_v18 = vadd.f32 %v717_v16, %v1372_v53 }
 0x16a   :  { %v763_v17 = vpack.c.bf16 %v618_v13, %v569_v11  ;;  %v767_v19 = vpack.c.bf16 %v718_v18, %v669_v15 }
 0x16c   :  { %811 = vst [vmem:[#allocation8 + $0x158] sm:$0xff] %v763_v17  ;;  %v570_v20 = vpop.f32.mrf.mxu2 }
 0x16d   :  { %815 = vst [vmem:[#allocation8 + $0x178] sm:$0xff] %v767_v19  ;;  %v571_v21 = vadd.f32 %v570_v20, %v1379_v55 }
 0x16f   :  { %v619_v22 = vpop.f32.mrf.mxu3 }
 0x170   :  { %v620_v23 = vadd.f32 %v619_v22, %v1382_v57 }
 0x172   :  { %v766_v44 = vpack.c.bf16 %v620_v23, %v571_v21 }
 0x174   :  { %814 = vst [vmem:[#allocation8 + $0x170] sm:$0xff] %v766_v44 }
 0x175   :  { %828 = dma.vmem_to_hbm [thread:$0]  %s821_s29, 6144, %s823_s5, [#allocation4], %s1243_s20, %s1243_s20, %s1244_s21  }
 0x176   :  { %1240 = dma.done.wait [#allocation4], 6144  }
 0x177   :  { %1241 = vsyncadd [#allocation4], 4294961152 }
 0x178   :  { %833 = vsyncpa [#allocation3], 1 }
 0x179   :  { %834 = vsyncpa [#allocation6], 1 }
 0x17a   :  { %835 = vsyncpa [#allocation4], 1 }

</bundles_post_ra>
